<compile_context>
chip_gen: v7x
topology: tpu7x:2x2x1
jax: 0.10.0
libtpu: 0.0.40
codegen_flags: <defaults>
</compile_context>

<pallas_src>
import functools

import jax
import jax.numpy as jnp
from jax.experimental import pallas as pl
from jax.experimental.pallas import tpu as pltpu


# ------------------------------ tile planning --------------------------------
_TK_PREF = 2048   # preferred K (reduction) tile
_TM_PREF = 512    # preferred M (row) tile
_TN_PREF = 512    # h_dim up to this stays a single full-width tile

_ONEHOT_TABLE_BYTES = 2 << 20   # above this, use the scalar-prefetch row gather


def _round_up(x, m):
    return -(-x // m) * m


def _plan_k(K, tk_pref=_TK_PREF):
    """Return (Kp, tk): padded K (weight is pre-padded ONCE at init) and K tile."""
    if K <= tk_pref:
        return K, K                               # single full-K tile, no padding
    if K % 128 == 0:                              # largest 128-aligned divisor
        for t in range(tk_pref, 511, -128):
            if K % t == 0:
                return K, t                       # divides exactly -> no padding
    return _round_up(K, 512), 512                 # fall back: pad K to 512-multiple


def _plan_m(M, tm_pref=_TM_PREF):
    """Return (Mp, tm).  Prefer a divisor of M (no hn padding)."""
    if M <= tm_pref:
        return M, M
    for t in range(tm_pref, 127, -8):
        if M % t == 0:
            return M, t
    return _round_up(M, 256), 256


def _plan_n(H, tn_pref=_TN_PREF):
    """Return tn.  H is never padded (tn always divides H or equals it)."""
    if H <= tn_pref:
        return H
    if H % 256 == 0:
        return 256
    if H % 128 == 0:
        return 128
    return H


# ----------------------------- Linear (node embedding) -----------------------
def _linear_kernel(x_ref, wt_ref, b_ref, o_ref, acc_ref, *, k_axis, add_bias):
    k = pl.program_id(k_axis)

    @pl.when(k == 0)
    def _():
        acc_ref[...] = jnp.zeros_like(acc_ref)

    x = x_ref[...]
    w = wt_ref[...]
    if w.dtype != x.dtype:           # bf16-weight path: cast activations in-kernel
        x = x.astype(w.dtype)
    acc_ref[...] += jnp.dot(x, w, preferred_element_type=jnp.float32)

    @pl.when(k == pl.num_programs(k_axis) - 1)
    def _():
        res = acc_ref[...]
        if add_bias:
            res = res + b_ref[...].astype(jnp.float32)
        o_ref[...] = res.astype(o_ref.dtype)


def linear_pallas(hn, wt, b2):
    """hn: [M, K]; wt: [Kp, H] pre-transposed (and pre-padded) weight; b2: [1, H]."""
    M, K = hn.shape
    Kp, H = wt.shape
    out_dtype = hn.dtype

    Kp_plan, tk = _plan_k(K)
    assert Kp == Kp_plan, "weight must be pre-padded with _plan_k at init"
    Mp, tm = _plan_m(M)
    tn = _plan_n(H)

    # Only hn is (rarely) padded per call; the weight/bias never are.
    if Kp != K or Mp != M:
        hn = jnp.pad(hn, ((0, Mp - M), (0, Kp - K)))

    mt, nt, kt = Mp // tm, H // tn, Kp // tk

    # Explicit VMEM budget: double-buffered inputs + f32 accumulator + output
    # buffers + headroom.  Stays well under v7x's 64 MiB (32 MiB scoped default).
    x_sz = jnp.dtype(hn.dtype).itemsize
    w_sz = jnp.dtype(wt.dtype).itemsize
    o_sz = max(jnp.dtype(out_dtype).itemsize, 4)
    vmem_bytes = int(2 * tm * tk * x_sz + 2 * tk * tn * w_sz + 2 * tn * 4
                     + tm * tn * 4 + 2 * tm * tn * o_sz + (6 << 20))

    if mt == 1 and nt == 1 and kt >= 2 and kt % 2 == 0:
        # ---- split-K: use both v7x TensorCores when the (M, N) grid is 1x1 ----
        kt_half = kt // 2
        kern = functools.partial(_linear_kernel, k_axis=1, add_bias=False)
        parts = pl.pallas_call(
            kern,
            out_shape=jax.ShapeDtypeStruct((Mp, 2 * H), jnp.float32),
            grid_spec=pltpu.PrefetchScalarGridSpec(
                num_scalar_prefetch=0,
                grid=(2, kt_half),
                in_specs=[
                    pl.BlockSpec((tm, tk), lambda s, k: (0, s * kt_half + k)),
                    pl.BlockSpec((tk, tn), lambda s, k: (s * kt_half + k, 0)),
                    pl.BlockSpec((1, tn), lambda s, k: (0, 0)),
                ],
                out_specs=pl.BlockSpec((tm, tn), lambda s, k: (0, s)),
                scratch_shapes=[pltpu.VMEM((tm, tn), jnp.float32)],
            ),
            compiler_params=pltpu.CompilerParams(
                dimension_semantics=("parallel", "arbitrary"),
                vmem_limit_bytes=vmem_bytes,
            ),
        )(hn, wt, b2)
        out = (parts[:, :H] + parts[:, H:] + b2).astype(out_dtype)
        return out[:M] if Mp != M else out

    # ---- standard K-last tiled matmul ----
    kern = functools.partial(_linear_kernel, k_axis=2, add_bias=True)
    out = pl.pallas_call(
        kern,
        out_shape=jax.ShapeDtypeStruct((Mp, H), out_dtype),
        grid_spec=pltpu.PrefetchScalarGridSpec(
            num_scalar_prefetch=0,
            grid=(mt, nt, kt),
            in_specs=[
                pl.BlockSpec((tm, tk), lambda i, j, k: (i, k)),
                pl.BlockSpec((tk, tn), lambda i, j, k: (k, j)),
                pl.BlockSpec((1, tn), lambda i, j, k: (0, j)),
            ],
            out_specs=pl.BlockSpec((tm, tn), lambda i, j, k: (i, j)),
            scratch_shapes=[pltpu.VMEM((tm, tn), jnp.float32)],
        ),
        compiler_params=pltpu.CompilerParams(
            dimension_semantics=("parallel", "parallel", "arbitrary"),
            vmem_limit_bytes=vmem_bytes,
        ),
    )(hn, wt, b2)
    return out[:M] if Mp != M else out


# --------------------------- Embedding gather (edges) ------------------------
def _gather_onehot_kernel(ids_ref, table_ref, o_ref):
    ids = ids_ref[...]                                            # (te, 1) int32
    te = ids.shape[0]
    nr = table_ref.shape[0]
    iota = jax.lax.broadcasted_iota(jnp.int32, (te, nr), 1)
    onehot = (iota == ids).astype(table_ref.dtype)                # (te, nr)
    rows = jnp.dot(onehot, table_ref[...], preferred_element_type=jnp.float32)
    o_ref[...] = rows.astype(o_ref.dtype)                         # lane-dense stores


def _gather_row_kernel(ids_ref, row_ref, o_ref):
    del ids_ref                       # consumed by the index_maps (scalar prefetch)
    o_ref[...] = row_ref[...]


def _embedding_onehot(table, ids, te):
    """Small/medium table: whole table VMEM-resident, gather as one-hot @ table."""
    E = ids.shape[0]
    num_rels, h_dim = table.shape

    te_eff = max(8, _round_up(E, 8)) if E <= te else te
    E_pad = _round_up(E, te_eff)
    if E_pad != E:
        ids = jnp.pad(ids, (0, E_pad - E))
    ids2 = ids.reshape(E_pad, 1)

    t_sz = jnp.dtype(table.dtype).itemsize
    vmem_bytes = int(num_rels * h_dim * t_sz          # table (single-buffered)
                     + 2 * te_eff * 4                 # ids blocks
                     + 2 * te_eff * h_dim * t_sz      # output blocks
                     + te_eff * num_rels * 4          # one-hot intermediate
                     + (4 << 20))

    out = pl.pallas_call(
        _gather_onehot_kernel,
        out_shape=jax.ShapeDtypeStruct((E_pad, h_dim), table.dtype),
        grid_spec=pltpu.PrefetchScalarGridSpec(
            num_scalar_prefetch=0,
            grid=(E_pad // te_eff,),
            in_specs=[
                pl.BlockSpec((te_eff, 1), lambda i: (i, 0)),
                # Constant index_map -> single buffer; halves the table's VMEM
                # footprint (matters on v7x's 64 MiB VMEM).
                pl.BlockSpec((num_rels, h_dim), lambda i: (0, 0),
                             pipeline_mode=pl.Buffered(1)),
            ],
            out_specs=pl.BlockSpec((te_eff, h_dim), lambda i: (i, 0)),
        ),
        compiler_params=pltpu.CompilerParams(
            dimension_semantics=("parallel",),
            vmem_limit_bytes=vmem_bytes,
        ),
    )(ids2, table)
    return out[:E] if E_pad != E else out


def _embedding_row_gather(table, ids):
    """Large-vocab path: scalar-prefetch ids drive the table index_map, streaming
    only the needed rows (O(E*h_dim) bytes; no table residency in VMEM)."""
    E = ids.shape[0]
    num_rels, h_dim = table.shape
    return pl.pallas_call(
        _gather_row_kernel,
        out_shape=jax.ShapeDtypeStruct((E, h_dim), table.dtype),
        grid_spec=pltpu.PrefetchScalarGridSpec(
            num_scalar_prefetch=1,
            grid=(E,),
            in_specs=[
                pl.BlockSpec((pl.Element(1), h_dim),
                             lambda i, ids_ref: (ids_ref[i], 0)),
            ],
            out_specs=pl.BlockSpec((pl.Element(1), h_dim),
                                   lambda i, ids_ref: (i, 0)),
        ),
        compiler_params=pltpu.CompilerParams(
            dimension_semantics=("arbitrary",),
        ),
    )(ids, table)


def embedding_pallas(table, ids, *, te=256):
    """table: [num_rels, h_dim], ids: [E] int -> [E, h_dim]."""
    num_rels, h_dim = table.shape
    ids = jnp.clip(ids.astype(jnp.int32), 0, num_rels - 1)   # gather can never OOB
    table_bytes = num_rels * h_dim * jnp.dtype(table.dtype).itemsize
    if table_bytes > _ONEHOT_TABLE_BYTES:
        return _embedding_row_gather(table, ids)
    return _embedding_onehot(table, ids, te)


# ------------------------------ Module wrapper --------------------------------
# Both pallas_calls run under one jit/dispatch.  (A fully fused two-output
# pallas_call for the tiny single-block regime would shave one more launch.)
@jax.jit
def _embedding_layer_forward(n_weight_t, n_bias, e_table, hn, ids):
    node_emb = linear_pallas(hn, n_weight_t, n_bias)
    edge_emb = embedding_pallas(e_table, ids)
    return node_emb, edge_emb


class EmbeddingLayerPallas:
    """Pallas-TPU equivalent of EmbeddingLayer:
    forward -> (Linear(num_nodes, h_dim)(hn), Embedding(num_rels, h_dim)(he.squeeze()))."""

    def __init__(self, num_nodes, num_rels, h_dim, key, *, weight_dtype=jnp.bfloat16):
        k1, k2, k3 = jax.random.split(key, 3)
        bound = 1.0 / (num_nodes ** 0.5)
        # nn.Linear.weight is [h_dim, num_nodes]; store it PRE-TRANSPOSED
        # ([num_nodes, h_dim]) and PRE-PADDED to the K tiling chosen by _plan_k —
        # once, here — so forward never pays a transpose or a weight-pad HBM pass.
        w = jax.random.uniform(k1, (num_nodes, h_dim), jnp.float32, -bound, bound)
        kp, _ = _plan_k(num_nodes)
        if kp != num_nodes:
            w = jnp.pad(w, ((0, kp - num_nodes), (0, 0)))
        # bf16 weights by default: the linear is weight-bandwidth bound and the MXU
        # accumulates in f32 anyway.  Use weight_dtype=jnp.float32 for bit-parity
        # with f32 nn.Linear.
        self.n_weight_t = w.astype(weight_dtype)
        self.n_bias = jax.random.uniform(k2, (1, h_dim), jnp.float32, -bound, bound)
        self.e_table = jax.random.normal(k3, (num_rels, h_dim), jnp.float32)
        self.num_nodes = num_nodes
        self.num_rels = num_rels
        self.h_dim = h_dim

    def forward(self, g, hn, r, he, norm):
        # g, r, norm are unused by the reference forward pass.
        ids = he.reshape(-1).astype(jnp.int32)   # robust vs .squeeze() when E == 1
        return _embedding_layer_forward(self.n_weight_t, self.n_bias,
                                        self.e_table, hn, ids)


# ----------------------------------- demo -------------------------------------
if __name__ == "__main__":
    def run_case(num_nodes, num_rels, h_dim, n_rows, n_edges, seed):
        key = jax.random.PRNGKey(seed)
        k_hn, k_he, k_params = jax.random.split(key, 3)
        hn = jax.random.normal(k_hn, (n_rows, num_nodes), jnp.float32)
        he = jax.random.randint(k_he, (n_edges, 1), 0, num_rels, jnp.int32)

        layer = EmbeddingLayerPallas(num_nodes, num_rels, h_dim, k_params)
        node_emb, edge_emb = layer.forward(None, hn, None, he, None)
        node_emb = jax.block_until_ready(node_emb)
        edge_emb = jax.block_until_ready(edge_emb)

        # plain-JAX reference under the same contract (bf16 inputs, f32 accumulate)
        w_f32 = layer.n_weight_t[:num_nodes].astype(jnp.float32)
        x_f32 = hn.astype(layer.n_weight_t.dtype).astype(jnp.float32)
        ref_node = x_f32 @ w_f32 + layer.n_bias
        ref_edge = layer.e_table[he.reshape(-1)]

        assert node_emb.shape == (n_rows, h_dim) and edge_emb.shape == (n_edges, h_dim)
        assert jnp.allclose(node_emb, ref_node, atol=1e-2, rtol=1e-2), \
            float(jnp.max(jnp.abs(node_emb - ref_node)))
        assert jnp.allclose(edge_emb, ref_edge)

    # tiny config: single-block linear, single-block one-hot gather
    run_case(num_nodes=64, num_rels=8, h_dim=128, n_rows=16, n_edges=8, seed=0)
    # larger config: exercises the 2048-wide K tiles, the split-K (two-TensorCore)
    # path, and the chunked / padded edge gather
    run_case(num_nodes=4096, num_rels=16, h_dim=128, n_rows=32, n_edges=300, seed=0)

    print("KERNEL_OK")
</pallas_src>

<mosaic_0001>
module attributes {stable_mosaic.version = 11 : i64} {
  func.func @_gather_onehot_kernel(%arg0: i32, %arg1: memref<8x1xi32, #tpu.memory_space<vmem>>, %arg2: memref<8x128xf32, #tpu.memory_space<vmem>>, %arg3: memref<8x128xf32, #tpu.memory_space<vmem>>) attributes {dimension_semantics = [#tpu.dimension_semantics<parallel>], iteration_bounds = array<i64: 1>, scalar_prefetch = 0 : i64, scratch_operands = 0 : i64, tpu.core_type = #tpu.core_type<tc>, window_params = [{transform_indices = @transform_0, window_bounds = array<i64: 8, 1>}, {pipeline_mode = #tpu.pipeline_mode<synchronous>, transform_indices = @transform_1, window_bounds = array<i64: 8, 128>}, {transform_indices = @transform_2, window_bounds = array<i64: 8, 128>}]} {
    %c0 = arith.constant 0 : index
    %c0_0 = arith.constant 0 : index
    %0 = vector.load %arg1[%c0, %c0_0] : memref<8x1xi32, #tpu.memory_space<vmem>>, vector<8x1xi32>
    %1 = tpu.iota {dimensions = array<i32: 1>} : vector<8x8xi32>
    %2 = vector.broadcast %0 : vector<8x1xi32> to vector<8x8xi32>
    %3 = arith.cmpi eq, %1, %2 : vector<8x8xi32>
    %4 = arith.extui %3 : vector<8x8xi1> to vector<8x8xi32>
    %5 = arith.sitofp %4 : vector<8x8xi32> to vector<8x8xf32>
    %c0_1 = arith.constant 0 : index
    %c0_2 = arith.constant 0 : index
    %6 = vector.load %arg2[%c0_1, %c0_2] : memref<8x128xf32, #tpu.memory_space<vmem>>, vector<8x128xf32>
    %cst = arith.constant dense<0.000000e+00> : vector<8x128xf32>
    %7 = tpu.matmul %5, %6, %cst {dimension_numbers = #tpu.dot_dimension_numbers<[1], [0], [0], [1], [0, 0, 1, 1], [], []>} : vector<8x8xf32>, vector<8x128xf32>, vector<8x128xf32> -> vector<8x128xf32>
    %c0_3 = arith.constant 0 : index
    %c0_4 = arith.constant 0 : index
    %8 = vector.load %arg3[%c0_3, %c0_4] : memref<8x128xf32, #tpu.memory_space<vmem>>, vector<8x128xf32>
    tpu.vector_store %arg3[%c0_3, %c0_4], %7 {strides = array<i32>} : memref<8x128xf32, #tpu.memory_space<vmem>>, vector<8x128xf32>,
    return
  }
  func.func @transform_0(%arg0: i32) -> (i32, i32) {
    %c0_i32 = arith.constant 0 : i32
    %c0_i32_0 = arith.constant 0 : i32
    return %arg0, %c0_i32 : i32, i32
  }
  func.func @transform_1(%arg0: i32) -> (i32, i32) {
    %c0_i32 = arith.constant 0 : i32
    %c0_i32_0 = arith.constant 0 : i32
    %c0_i32_1 = arith.constant 0 : i32
    return %c0_i32, %c0_i32_0 : i32, i32
  }
  func.func @transform_2(%arg0: i32) -> (i32, i32) {
    %c0_i32 = arith.constant 0 : i32
    %c0_i32_0 = arith.constant 0 : i32
    return %arg0, %c0_i32 : i32, i32
  }
}

module attributes {stable_mosaic.version = 11 : i64} {
  func.func @_linear_kernel(%arg0: i32, %arg1: i32, %arg2: i32, %arg3: memref<16x64xf32, #tpu.memory_space<vmem>>, %arg4: memref<64x128xbf16, #tpu.memory_space<vmem>>, %arg5: memref<1x128xf32, #tpu.memory_space<vmem>>, %arg6: memref<16x128xf32, #tpu.memory_space<vmem>>, %arg7: memref<16x128xf32, #tpu.memory_space<vmem>>) attributes {dimension_semantics = [#tpu.dimension_semantics<parallel>, #tpu.dimension_semantics<parallel>, #tpu.dimension_semantics<arbitrary>], iteration_bounds = array<i64: 1, 1, 1>, scalar_prefetch = 0 : i64, scratch_operands = 1 : i64, tpu.core_type = #tpu.core_type<tc>, window_params = [{transform_indices = @transform_0, window_bounds = array<i64: 16, 64>}, {transform_indices = @transform_1, window_bounds = array<i64: 64, 128>}, {transform_indices = @transform_2, window_bounds = array<i64: 1, 128>}, {transform_indices = @transform_3, window_bounds = array<i64: 16, 128>}]} {
    %c0_i32 = arith.constant 0 : i32
    %0 = arith.cmpi eq, %arg2, %c0_i32 : i32
    %1 = arith.extui %0 : i1 to i32
    %c0_i32_0 = arith.constant 0 : i32
    %2 = arith.cmpi ne, %1, %c0_i32_0 : i32
    scf.if %2 {
      %cst_10 = arith.constant 0.000000e+00 : f32
      %13 = vector.broadcast %cst_10 : f32 to vector<16x128xf32>
      %c0_11 = arith.constant 0 : index
      %c0_12 = arith.constant 0 : index
      %14 = vector.load %arg7[%c0_11, %c0_12] : memref<16x128xf32, #tpu.memory_space<vmem>>, vector<16x128xf32>
      tpu.vector_store %arg7[%c0_11, %c0_12], %13 {strides = array<i32>} : memref<16x128xf32, #tpu.memory_space<vmem>>, vector<16x128xf32>,
    } else {
    }
    %c0 = arith.constant 0 : index
    %c0_1 = arith.constant 0 : index
    %3 = vector.load %arg3[%c0, %c0_1] : memref<16x64xf32, #tpu.memory_space<vmem>>, vector<16x64xf32>
    %c0_2 = arith.constant 0 : index
    %c0_3 = arith.constant 0 : index
    %4 = vector.load %arg4[%c0_2, %c0_3] : memref<64x128xbf16, #tpu.memory_space<vmem>>, vector<64x128xbf16>
    %5 = arith.truncf %3 : vector<16x64xf32> to vector<16x64xbf16>
    %c0_4 = arith.constant 0 : index
    %c0_5 = arith.constant 0 : index
    %6 = vector.load %arg7[%c0_4, %c0_5] : memref<16x128xf32, #tpu.memory_space<vmem>>, vector<16x128xf32>
    %cst = arith.constant dense<0.000000e+00> : vector<16x128xf32>
    %7 = tpu.matmul %5, %4, %cst {dimension_numbers = #tpu.dot_dimension_numbers<[1], [0], [0], [1], [0, 0, 1, 1], [], []>} : vector<16x64xbf16>, vector<64x128xbf16>, vector<16x128xf32> -> vector<16x128xf32>
    %8 = arith.addf %6, %7 : vector<16x128xf32>
    %c0_6 = arith.constant 0 : index
    %c0_7 = arith.constant 0 : index
    %9 = vector.load %arg7[%c0_6, %c0_7] : memref<16x128xf32, #tpu.memory_space<vmem>>, vector<16x128xf32>
    tpu.vector_store %arg7[%c0_6, %c0_7], %8 {strides = array<i32>} : memref<16x128xf32, #tpu.memory_space<vmem>>, vector<16x128xf32>,
    %c0_i32_8 = arith.constant 0 : i32
    %10 = arith.cmpi eq, %arg2, %c0_i32_8 : i32
    %11 = arith.extui %10 : i1 to i32
    %c0_i32_9 = arith.constant 0 : i32
    %12 = arith.cmpi ne, %11, %c0_i32_9 : i32
    scf.if %12 {
      %c0_10 = arith.constant 0 : index
      %c0_11 = arith.constant 0 : index
      %13 = vector.load %arg7[%c0_10, %c0_11] : memref<16x128xf32, #tpu.memory_space<vmem>>, vector<16x128xf32>
      %c0_12 = arith.constant 0 : index
      %c0_13 = arith.constant 0 : index
      %14 = vector.load %arg5[%c0_12, %c0_13] : memref<1x128xf32, #tpu.memory_space<vmem>>, vector<1x128xf32>
      %15 = vector.broadcast %14 : vector<1x128xf32> to vector<16x128xf32>
      %16 = arith.addf %13, %15 : vector<16x128xf32>
      %c0_14 = arith.constant 0 : index
      %c0_15 = arith.constant 0 : index
      %17 = vector.load %arg6[%c0_14, %c0_15] : memref<16x128xf32, #tpu.memory_space<vmem>>, vector<16x128xf32>
      tpu.vector_store %arg6[%c0_14, %c0_15], %16 {strides = array<i32>} : memref<16x128xf32, #tpu.memory_space<vmem>>, vector<16x128xf32>,
    } else {
    }
    return
  }
  func.func @transform_0(%arg0: i32, %arg1: i32, %arg2: i32) -> (i32, i32) {
    %c0_i32 = arith.constant 0 : i32
    return %arg0, %arg2 : i32, i32
  }
  func.func @transform_1(%arg0: i32, %arg1: i32, %arg2: i32) -> (i32, i32) {
    %c0_i32 = arith.constant 0 : i32
    return %arg2, %arg1 : i32, i32
  }
  func.func @transform_2(%arg0: i32, %arg1: i32, %arg2: i32) -> (i32, i32) {
    %c0_i32 = arith.constant 0 : i32
    %c0_i32_0 = arith.constant 0 : i32
    return %c0_i32, %arg1 : i32, i32
  }
  func.func @transform_3(%arg0: i32, %arg1: i32, %arg2: i32) -> (i32, i32) {
    %c0_i32 = arith.constant 0 : i32
    return %arg0, %arg1 : i32, i32
  }
}

</mosaic_0001>

<bundles_post_ra>
// kernel: _embedding_layer_forward.3
= control target key start
LH: loop header
LB: loop body
LE: loop exit
PB: predicated region body
PF: predicated region fallthrough
CT: control target
= control target key end

     0   :  { %7 = vsyncpa [#allocation3], 0  ;;  %s234_s0 = inlined_call_operand.vmem [shape: s32[8,1], index: 0, kind: input, shape index: {}]   ;;  %s235_s1 = inlined_call_operand.hbm [shape: f32[8,128], index: 1, kind: input, shape index: {}]   ;;  %s236_s2 = inlined_call_operand.hbm [shape: f32[8,128], index: 2, kind: output, shape index: {}]  }
   0x1   :  { %8 = vsyncpa [#allocation4], 0  ;;  %s187_s9 = smov [#allocation2]   ;;  %s139_s13 = scalar_lea.hbm %s235_s1, 128 }
   0x2   :  { %s17_s10 = sshll.u32 %s187_s9, 4  ;;  %p140_p0 = scmp.ne.s32.totalorder %s235_s1, %s139_s13  ;;  %s18_s10 = int_to_ptr.vmem [resolvable:$true] %s17_s10 }
   0x3   :  { %p143_p1 = scmp.lt.u32.totalorder %s139_s13, %s235_s1 }
   0x5   :  { %p145_p2 = pnand %p143_p1, %p140_p0 }
   0x7   :  { %148 = shalt.err (!%p145_p2)
}
   0x8   :  { %s149_s18 = scalar_lea.vmem %s18_s10, 128  ;;  %p154_p4 = scmp.lt.s32.totalorder %s18_s10, %s18_s10 }
   0x9   :  { %p150_p3 = scmp.ne.s32.totalorder %s18_s10, %s149_s18  ;;  %p155_p5 = scmp.lt.s32.totalorder %s149_s18, %s149_s18 }
   0xb   :  { %p156_p6 = por %p155_p5, %p154_p4 }
   0xd   :  { %p157_p7 = pnand %p156_p6, %p150_p3 }
   0xf   :  { %160 = shalt.err (!%p157_p7)
}
  0x10   :  { %20 = dma.hbm_to_vmem [thread:$0]  %s235_s1, 128, %s18_s10, [#allocation3]  }
  0x11   :  { %183 = dma.done.wait [#allocation3], 128  }
  0x12   :  { %184 = vsyncadd [#allocation3], 4294967168  ;;  %v188_v0 = vmov 0   ;;  %v189_v1 = vmov 0.0   ;;  %v24_v2 = vld [vmem:[%s234_s0] sm:$0xff]  ;;  %vm190_vm0 = vmmov 0   ;;  %v25_v4 = vlaneseq }
  0x13   :  { %138 = vset.pattern.permute.xlu0 %v188_v0  ;;  %128 = vmatprep.subr.mxu0 %v189_v1  ;;  %v33_v3 = vld [vmem:[#allocation2] sm:$0xff]  ;;  %vm34_vm1 = vcmask 64512   ;;  %s191_s1 = smov [#allocation5]  }
  0x14   :  { %28 = vperm.xlu0 %138, %v24_v2   ;;  %129 = vmatpush3.msra.mxu0 %v33_v3  ;;  %v26_v5 = vand.u32 127, %v25_v4  ;;  %s115_s23 = sshll.u32 %s191_s1, 4  ;;  %s116_s23 = int_to_ptr.vmem [resolvable:$true] %s115_s23 }
  0x15   :  { %130 = vmatprep.mubr.msk.f32.mxu0 %vm190_vm0, %v189_v1  ;;  %s161_s24 = scalar_lea.vmem %s116_s23, 128  ;;  %p166_p9 = scmp.lt.s32.totalorder %s116_s23, %s116_s23 }
  0x16   :  { %p162_p8 = scmp.ne.s32.totalorder %s116_s23, %s161_s24  ;;  %p167_p10 = scmp.lt.s32.totalorder %s161_s24, %s161_s24 }
  0x18   :  { %p168_p11 = por %p167_p10, %p166_p9 }
  0x1a   :  { %p169_p12 = pnand %p168_p11, %p162_p8 }
  0x93   :  { %v29_v6 = vpop.permute.xlu0 %28 }
  0x94   :  { %vm30_vm2 = vcmp.eq.s32.totalorder %v26_v5, %v29_v6 }
  0x95   :  { %v124_v7 = vsel %vm30_vm2, 1.0, %v189_v1 }
  0x96   :  { %131 = vmatmul.mubr.msk.f32.vlgmr.msra.gmra.mrb[0].mxu0 %vm34_vm1, %v124_v7 }
 0x169   :  { %v104_v8 = vpop.f32.mrb[0].mxu0 }
 0x16a   :  { %108 = vst [vmem:[#allocation5] sm:$0xff] %v104_v8  ;;  %v132_v9 = vpop.f32.mrb[1].mxu0 }
 0x16b   :  { %172 = shalt.err (!%p169_p12)
}
 0x16c   :  { %s173_s26 = scalar_lea.hbm %s236_s2, 128 }
 0x16d   :  { %p174_p13 = scmp.ne.s32.totalorder %s236_s2, %s173_s26  ;;  %p177_p0 = scmp.lt.u32.totalorder %s173_s26, %s236_s2 }
 0x16f   :  { %p179_p1 = pnand %p177_p0, %p174_p13 }
 0x171   :  { %182 = shalt.err (!%p179_p1)
}
 0x172   :  { %118 = dma.vmem_to_hbm [thread:$0]  %s116_s23, 128, %s236_s2, [#allocation4]  }
 0x173   :  { %185 = dma.done.wait [#allocation4], 128  }
 0x174   :  { %186 = vsyncadd [#allocation4], 4294967168 }
 0x175   :  { %122 = vsyncpa [#allocation3], 1 }
 0x176   :  { %123 = vsyncpa [#allocation4], 1 }

// kernel: _embedding_layer_forward.2
= control target key start
LH: loop header
LB: loop body
LE: loop exit
PB: predicated region body
PF: predicated region fallthrough
CT: control target
= control target key end

     0   :  { %8 = vsyncpa [#allocation4], 0  ;;  %s302_s0 = inlined_call_operand.vmem [shape: f32[16,64], index: 0, kind: input, shape index: {}]   ;;  %s303_s1 = inlined_call_operand.vmem [shape: bf16[64,128], index: 1, kind: input, shape index: {}]   ;;  %s304_s2 = inlined_call_operand.hbm [shape: f32[1,128], index: 2, kind: input, shape index: {}]   ;;  %s305_s3 = inlined_call_operand.hbm [shape: f32[16,128], index: 3, kind: output, shape index: {}]  }
   0x1   :  { %9 = vsyncpa [#allocation5], 0  ;;  %s234_s12 = smov [#allocation3]   ;;  %s186_s16 = scalar_lea.hbm %s304_s2, 16 }
   0x2   :  { %s20_s13 = sshll.u32 %s234_s12, 4  ;;  %p187_p0 = scmp.ne.s32.totalorder %s304_s2, %s186_s16  ;;  %s21_s13 = int_to_ptr.vmem [resolvable:$true] %s20_s13 }
   0x3   :  { %p190_p1 = scmp.lt.u32.totalorder %s186_s16, %s304_s2 }
   0x5   :  { %p192_p2 = pnand %p190_p1, %p187_p0 }
   0x7   :  { %195 = shalt.err (!%p192_p2)
}
   0x8   :  { %s196_s21 = scalar_lea.vmem %s21_s13, 16  ;;  %s200_s22 = scalar_lea.vmem %s21_s13, 32 }
   0x9   :  { %p197_p3 = scmp.ne.s32.totalorder %s21_s13, %s196_s21  ;;  %p201_p4 = scmp.lt.s32.totalorder %s21_s13, %s21_s13 }
   0xa   :  { %p202_p5 = scmp.lt.s32.totalorder %s200_s22, %s196_s21 }
   0xc   :  { %p203_p6 = por %p202_p5, %p201_p4 }
   0xe   :  { %p204_p7 = pnand %p203_p6, %p197_p3 }
  0x10   :  { %207 = shalt.err (!%p204_p7)
}
  0x11   :  { %23 = dma.hbm_to_vmem [thread:$0]  %s304_s2, 16, %s21_s13, [#allocation4]  }
  0x12   :  { %230 = dma.done.wait [#allocation4], 16  }
  0x13   :  { %231 = vsyncadd [#allocation4], 4294967280  ;;  %v235_v0 = vmov 0.0   ;;  %vm236_vm0 = vmmov 0   ;;  %v182_v1 = vld [vmem:[%s303_s1] sm:$0xff]   ;;  %v183_v2 = vld [vmem:[%s303_s1 + $0x8] sm:$0xff]  }
  0x14   :  { %164 = vmatprep.subr.bf16.mxu0 %v235_v0  ;;  %172 = vmatprep.mubr.msk.bf16.mxu0 %vm236_vm0, %v235_v0  ;;  %v184_v3 = vld [vmem:[%s303_s1 + $0x10] sm:$0xff]   ;;  %v185_v4 = vld [vmem:[%s303_s1 + $0x18] sm:$0xff]   ;;  %v34_v5 = vld [vmem:[%s302_s0] sm:$0xff]  ;;  %vm71_vm1 = vcmask 523264   ;;  %s237_s9 = smov [#allocation6]  }
  0x15   :  { %165 = vmatpush3.bf16.msra.mxu0 %v182_v1  ;;  %v35_v6 = vld [vmem:[%s302_s0 + $0x8] sm:$0xff]  ;;  %v158_v8 = vld [vmem:[#allocation3] ss:$0 sm:$0xff]  ;;  %s141_s10 = sshll.u32 %s237_s9, 4  ;;  %s142_s10 = int_to_ptr.vmem [resolvable:$true] %s141_s10 }
  0x16   :  { %166 = vmatprep.subr.bf16.mxu0 %v235_v0  ;;  %v44_v7 = vpack.c.bf16 %v35_v6, %v34_v5  ;;  %s208_s1 = scalar_lea.vmem %s142_s10, 256  ;;  %p213_p9 = scmp.lt.s32.totalorder %s142_s10, %s142_s10 }
  0x17   :  { %p209_p8 = scmp.ne.s32.totalorder %s142_s10, %s208_s1  ;;  %p214_p10 = scmp.lt.s32.totalorder %s208_s1, %s208_s1 }
  0x19   :  { %167 = vmatpush3.bf16.msra.mxu0 %v183_v2  ;;  %p215_p11 = por %p214_p10, %p213_p9 }
  0x1a   :  { %168 = vmatprep.subr.bf16.mxu0 %v235_v0 }
  0x1b   :  { %p216_p12 = pnand %p215_p11, %p209_p8 }
  0x1d   :  { %169 = vmatpush3.bf16.msra.mxu0 %v184_v3 }
  0x1e   :  { %170 = vmatprep.subr.bf16.mxu0 %v235_v0 }
  0x21   :  { %171 = vmatpush3.bf16.msra.mxu0 %v185_v4 }
  0x24   :  { %173 = vmatmul.mubr.msk.bf16.vlgmr.msra.gmra.mrb[0].mxu0 %vm71_vm1, %v44_v7 }
  0xf7   :  { %v109_v9 = vpop.f32.mrb[0].mxu0 }
  0xf8   :  { %v132_v10 = vadd.f32 %v158_v8, %v109_v9  ;;  %v174_v11 = vpop.f32.mrb[1].mxu0 }
  0xf9   :  { %v112_v12 = vpop.f32.mrb[2].mxu0 }
  0xfa   :  { %134 = vst [vmem:[#allocation6] sm:$0xff] %v132_v10  ;;  %v133_v13 = vadd.f32 %v158_v8, %v112_v12  ;;  %v175_v14 = vpop.f32.mrb[3].mxu0 }
  0xfc   :  { %135 = vst [vmem:[#allocation6 + $0x8] sm:$0xff] %v133_v13 }
  0xfd   :  { %219 = shalt.err (!%p216_p12)
}
  0xfe   :  { %s220_s12 = scalar_lea.hbm %s305_s3, 256 }
  0xff   :  { %p221_p13 = scmp.ne.s32.totalorder %s305_s3, %s220_s12  ;;  %p224_p0 = scmp.lt.u32.totalorder %s220_s12, %s305_s3 }
 0x101   :  { %p226_p1 = pnand %p224_p0, %p221_p13 }
 0x103   :  { %229 = shalt.err (!%p226_p1)
}
 0x104   :  { %s238_s17 = smov 128   ;;  %s239_s18 = smov 8  }
 0x105   :  { %147 = dma.vmem_to_hbm [thread:$0]  %s142_s10, 256, %s305_s3, [#allocation5], %s238_s17, %s238_s17, %s239_s18  }
 0x106   :  { %232 = dma.done.wait [#allocation5], 256  }
 0x107   :  { %233 = vsyncadd [#allocation5], 4294967040 }
 0x108   :  { %151 = vsyncpa [#allocation4], 1 }
 0x109   :  { %152 = vsyncpa [#allocation5], 1 }

</bundles_post_ra>
